<compile_context>
chip_gen: v6e
topology: v6e:2x2x1
jax: 0.10.0
libtpu: 0.0.40
codegen_flags: <defaults>
</compile_context>

<pallas_src>
import jax
import jax.numpy as jnp
from jax.experimental import pallas as pl
from jax.experimental.pallas import tpu as pltpu


# ----------------------------------------------------------------------------
# Weight preprocessing: turn a 3x3 HWIO conv weight into 3 "width-banded"
# matmul matrices, one per kernel row kh:
#   M[kh] has shape (W*Cin, W*Cout) with
#   M[kh][q*Cin + ci, w*Cout + co] = wt[kh, q - w + 1, ci, co]  (0 <= q-w+1 < 3)
# so that, with a row-zero-padded activation slab pad of shape (H+2, W*Cin),
#   out(H, W*Cout) = sum_kh pad[kh:kh+H, :] @ M[kh]   (+ bias, + optional ReLU)
# Width-halo taps are implicitly dropped (they would multiply zero padding).
# ----------------------------------------------------------------------------
def _banded_conv_weights(w_hwio, W):
    Cin, Cout = int(w_hwio.shape[2]), int(w_hwio.shape[3])
    w_out = jnp.arange(W)
    kw = jnp.arange(3)
    w_in = jnp.arange(W)
    sel = ((w_out[:, None, None] + kw[None, :, None] - 1)
           == w_in[None, None, :]).astype(w_hwio.dtype)        # (W, 3, W)
    M = jnp.einsum("wkq,hkio->hqiwo", sel, w_hwio)             # (3, W, Cin, W, Cout)
    return M.reshape(3, W * Cin, W * Cout)


# ----------------------------------------------------------------------------
# Fused kernel: walks the (trace-time) layer plan, keeping the activation as a
# lane-dense (H, W*C) f32 value in VMEM, and stores every extracted layer plus
# the final activation to its own output ref.
# ----------------------------------------------------------------------------
def _build_fused_kernel(plan, H, W, n_convs, n_outs):
    def kernel(x_ref, *refs):
        conv_refs = refs[:2 * n_convs]                       # (M, bias) pairs
        out_refs = refs[2 * n_convs:2 * n_convs + n_outs]
        pad_refs = refs[2 * n_convs + n_outs:]               # one per conv

        act = x_ref[0]                                       # (H, W*C_cur)
        out_i = 0
        for kind, payload, emit in plan:
            if kind == "conv":
                ci, cin, cout = payload
                m_ref = conv_refs[2 * ci]                    # (3, W*cin, W*cout)
                b_ref = conv_refs[2 * ci + 1]                # (1, W*cout)
                pad_ref = pad_refs[ci]                       # (H+2, W*cin)
                # Row halo via zero-padded scratch slab (width halo lives in
                # the banded weights).
                pad_ref[...] = jnp.zeros_like(pad_ref)
                pad_ref[pl.ds(1, H), :] = act
                acc = jnp.zeros((H, W * cout), jnp.float32)
                for kh in range(3):                          # 3 MXU matmuls
                    acc = acc + jnp.dot(
                        pad_ref[pl.ds(kh, H), :], m_ref[kh],
                        preferred_element_type=jnp.float32)
                act = acc + b_ref[...]                       # bias epilogue
            elif kind == "relu":
                act = jnp.maximum(act, 0.0)                  # fused ReLU (VPU)
            else:
                raise ValueError(kind)
            if emit:                                         # extracted layer
                out_refs[out_i][0] = act.astype(out_refs[out_i].dtype)
                out_i += 1
        # PyTorch forward returns outputs + [x]: final activation last.
        out_refs[n_outs - 1][0] = act.astype(out_refs[n_outs - 1].dtype)

    return kernel


def _fused_forward(x2d, conv_params, plan, out_channels, H, W):
    N = x2d.shape[0]
    n_convs = sum(1 for k, _, _ in plan if k == "conv")
    n_outs = len(out_channels)
    kernel = _build_fused_kernel(plan, H, W, n_convs, n_outs)

    in_specs = [pl.BlockSpec((1,) + x2d.shape[1:], lambda n: (n, 0, 0))]
    for p in conv_params:
        if p.ndim == 3:
            in_specs.append(pl.BlockSpec(p.shape, lambda n: (0, 0, 0)))
        else:
            in_specs.append(pl.BlockSpec(p.shape, lambda n: (0, 0)))

    out_shape = tuple(jax.ShapeDtypeStruct((N, H, W * c), x2d.dtype)
                      for c in out_channels)
    out_specs = tuple(pl.BlockSpec((1, H, W * c), lambda n: (n, 0, 0))
                      for c in out_channels)

    scratch = [pltpu.VMEM((H + 2, W * payload[1]), jnp.float32)
               for kind, payload, _ in plan if kind == "conv"]

    return pl.pallas_call(
        kernel,
        out_shape=out_shape,
        grid_spec=pltpu.PrefetchScalarGridSpec(
            num_scalar_prefetch=0,
            grid=(N,),
            in_specs=in_specs,
            out_specs=out_specs,
            scratch_shapes=scratch,
        ),
        compiler_params=pltpu.CompilerParams(
            dimension_semantics=("parallel",)),   # batch-parallel (v7x 2 TCs)
    )(x2d, *conv_params)


# ----------------------------------------------------------------------------
# FeatureExtractor: walk over the submodule's named children, apply each,
# collect extracted layers, return outputs + [x]   (matches PyTorch forward),
# but executed as one fused Pallas kernel.
# ----------------------------------------------------------------------------
class FeatureExtractorPallas:
    def __init__(self, submodule, extracted_layers):
        # `submodule` is an ordered list of (name, kind, params) entries,
        # playing the role of `submodule._modules.items()`.
        self.submodule = list(submodule)
        self.extracted_layers = list(extracted_layers)

    def __call__(self, x_nchw):
        N, C0, H, W = x_nchw.shape
        x2d = jnp.transpose(x_nchw, (0, 2, 3, 1)).reshape(N, H, W * C0)
        x2d = x2d.astype(jnp.float32)

        plan, conv_params, out_channels = [], [], []
        cur_c, conv_i = C0, 0
        for name, kind, params in self.submodule:
            extract = name in self.extracted_layers
            if kind == "conv":
                w, b = params
                cin, cout = int(w.shape[2]), int(w.shape[3])
                assert cin == cur_c, "channel mismatch in submodule chain"
                conv_params.append(_banded_conv_weights(w, W))
                conv_params.append(jnp.tile(b, W).reshape(1, W * cout))
                plan.append(("conv", (conv_i, cin, cout), extract))
                conv_i += 1
                cur_c = cout
            elif kind == "relu":
                plan.append(("relu", None, extract))
            else:
                raise ValueError(f"unsupported module kind: {kind}")
            if extract:
                out_channels.append(cur_c)
        out_channels.append(cur_c)          # final x appended, like PyTorch

        outs = _fused_forward(x2d, conv_params, plan, out_channels, H, W)

        results = []
        for arr, c in zip(outs, out_channels):
            nhwc = arr.reshape(N, H, W, c)
            results.append(jnp.transpose(nhwc, (0, 3, 1, 2)).astype(x_nchw.dtype))
        return results


# ----------------------------------------------------------------------------
# Pure-JAX reference (correctness check of the kernel path)
# ----------------------------------------------------------------------------
def _ref_conv3x3_same(x_nhwc, w, b):
    y = jax.lax.conv_general_dilated(
        x_nhwc, w, window_strides=(1, 1), padding="SAME",
        dimension_numbers=("NHWC", "HWIO", "NHWC"))
    return y + b[None, None, None, :]


def _ref_forward(submodule, extracted_layers, x_nchw):
    x = jnp.transpose(x_nchw, (0, 2, 3, 1))
    outputs = []
    for name, kind, params in submodule:
        if kind == "conv":
            w, b = params
            x = _ref_conv3x3_same(x, w, b)
        else:
            x = jnp.maximum(x, 0.0)
        if name in extracted_layers:
            outputs.append(jnp.transpose(x, (0, 3, 1, 2)))
    outputs.append(jnp.transpose(x, (0, 3, 1, 2)))
    return outputs


# ----------------------------------------------------------------------------
if __name__ == "__main__":
    key = jax.random.PRNGKey(0)
    kx, k1, k2, k3, kb1, kb2, kb3 = jax.random.split(key, 7)

    # Deterministic synthetic parameters (shapes implied by the conv stack).
    N, Cin, H, W = 2, 4, 16, 16
    C1, C2, C3 = 8, 8, 4
    w1 = 0.1 * jax.random.normal(k1, (3, 3, Cin, C1), jnp.float32)
    b1 = 0.1 * jax.random.normal(kb1, (C1,), jnp.float32)
    w2 = 0.1 * jax.random.normal(k2, (3, 3, C1, C2), jnp.float32)
    b2 = 0.1 * jax.random.normal(kb2, (C2,), jnp.float32)
    w3 = 0.1 * jax.random.normal(k3, (3, 3, C2, C3), jnp.float32)
    b3 = 0.1 * jax.random.normal(kb3, (C3,), jnp.float32)

    # Ordered "named children" of the synthetic submodule.
    submodule = [
        ("conv1", "conv", (w1, b1)),
        ("relu1", "relu", None),
        ("conv2", "conv", (w2, b2)),
        ("relu2", "relu", None),
        ("conv3", "conv", (w3, b3)),
    ]
    extracted_layers = ["relu1", "conv2"]

    # Input in PyTorch NCHW convention.
    x = jax.random.normal(kx, (N, Cin, H, W), jnp.float32)

    extractor = FeatureExtractorPallas(submodule, extracted_layers)
    fwd = jax.jit(lambda xx: extractor(xx))
    outs = fwd(x)
    outs = [jax.block_until_ready(o) for o in outs]

    # Validate against the pure-JAX reference.
    refs = _ref_forward(submodule, extracted_layers, x)
    assert len(outs) == len(refs) == len(extracted_layers) + 1
    for o, r in zip(outs, refs):
        assert o.shape == r.shape and o.dtype == r.dtype
        assert jnp.max(jnp.abs(o - r)) < 5e-4

    print("KERNEL_OK")
</pallas_src>

<mosaic_0001>
module attributes {stable_mosaic.version = 11 : i64} {
  func.func @kernel(%arg0: i32, %arg1: memref<1x16x64xf32, #tpu.memory_space<vmem>>, %arg2: memref<3x64x128xf32, #tpu.memory_space<vmem>>, %arg3: memref<1x128xf32, #tpu.memory_space<vmem>>, %arg4: memref<3x128x128xf32, #tpu.memory_space<vmem>>, %arg5: memref<1x128xf32, #tpu.memory_space<vmem>>, %arg6: memref<3x128x64xf32, #tpu.memory_space<vmem>>, %arg7: memref<1x64xf32, #tpu.memory_space<vmem>>, %arg8: memref<1x16x128xf32, #tpu.memory_space<vmem>>, %arg9: memref<1x16x128xf32, #tpu.memory_space<vmem>>, %arg10: memref<1x16x64xf32, #tpu.memory_space<vmem>>, %arg11: memref<18x64xf32, #tpu.memory_space<vmem>>, %arg12: memref<18x128xf32, #tpu.memory_space<vmem>>, %arg13: memref<18x128xf32, #tpu.memory_space<vmem>>) attributes {dimension_semantics = [#tpu.dimension_semantics<parallel>], iteration_bounds = array<i64: 2>, scalar_prefetch = 0 : i64, scratch_operands = 3 : i64, tpu.core_type = #tpu.core_type<tc>, window_params = [{transform_indices = @transform_0, window_bounds = array<i64: 1, 16, 64>}, {pipeline_mode = #tpu.pipeline_mode<synchronous>, transform_indices = @transform_1, window_bounds = array<i64: 3, 64, 128>}, {pipeline_mode = #tpu.pipeline_mode<synchronous>, transform_indices = @transform_2, window_bounds = array<i64: 1, 128>}, {pipeline_mode = #tpu.pipeline_mode<synchronous>, transform_indices = @transform_3, window_bounds = array<i64: 3, 128, 128>}, {pipeline_mode = #tpu.pipeline_mode<synchronous>, transform_indices = @transform_4, window_bounds = array<i64: 1, 128>}, {pipeline_mode = #tpu.pipeline_mode<synchronous>, transform_indices = @transform_5, window_bounds = array<i64: 3, 128, 64>}, {pipeline_mode = #tpu.pipeline_mode<synchronous>, transform_indices = @transform_6, window_bounds = array<i64: 1, 64>}, {transform_indices = @transform_7, window_bounds = array<i64: 1, 16, 128>}, {transform_indices = @transform_8, window_bounds = array<i64: 1, 16, 128>}, {transform_indices = @transform_9, window_bounds = array<i64: 1, 16, 64>}]} {
    %c0 = arith.constant 0 : index
    %c0_0 = arith.constant 0 : index
    %c0_1 = arith.constant 0 : index
    %0 = vector.load %arg1[%c0, %c0_0, %c0_1] : memref<1x16x64xf32, #tpu.memory_space<vmem>>, vector<1x16x64xf32>
    %1 = vector.shape_cast %0 : vector<1x16x64xf32> to vector<16x64xf32>
    %cst = arith.constant 0.000000e+00 : f32
    %2 = vector.broadcast %cst : f32 to vector<18x64xf32>
    %c0_2 = arith.constant 0 : index
    %c0_3 = arith.constant 0 : index
    %3 = vector.load %arg11[%c0_2, %c0_3] : memref<18x64xf32, #tpu.memory_space<vmem>>, vector<18x64xf32>
    tpu.vector_store %arg11[%c0_2, %c0_3], %2 {strides = array<i32>} : memref<18x64xf32, #tpu.memory_space<vmem>>, vector<18x64xf32>,
    %c1 = arith.constant 1 : index
    %c0_4 = arith.constant 0 : index
    %4 = vector.load %arg11[%c1, %c0_4] : memref<18x64xf32, #tpu.memory_space<vmem>>, vector<16x64xf32>
    tpu.vector_store %arg11[%c1, %c0_4], %1 {strides = array<i32>} : memref<18x64xf32, #tpu.memory_space<vmem>>, vector<16x64xf32>,
    %cst_5 = arith.constant 0.000000e+00 : f32
    %5 = vector.broadcast %cst_5 : f32 to vector<16x128xf32>
    %c0_6 = arith.constant 0 : index
    %c0_7 = arith.constant 0 : index
    %6 = vector.load %arg11[%c0_6, %c0_7] : memref<18x64xf32, #tpu.memory_space<vmem>>, vector<16x64xf32>
    %c0_8 = arith.constant 0 : index
    %c0_9 = arith.constant 0 : index
    %c0_10 = arith.constant 0 : index
    %7 = vector.load %arg2[%c0_8, %c0_9, %c0_10] : memref<3x64x128xf32, #tpu.memory_space<vmem>>, vector<1x64x128xf32>
    %8 = vector.shape_cast %7 : vector<1x64x128xf32> to vector<64x128xf32>
    %cst_11 = arith.constant dense<0.000000e+00> : vector<16x128xf32>
    %9 = tpu.matmul %6, %8, %cst_11 {dimension_numbers = #tpu.dot_dimension_numbers<[1], [0], [0], [1], [0, 0, 1, 1], [], []>} : vector<16x64xf32>, vector<64x128xf32>, vector<16x128xf32> -> vector<16x128xf32>
    %10 = arith.addf %5, %9 : vector<16x128xf32>
    %c1_12 = arith.constant 1 : index
    %c0_13 = arith.constant 0 : index
    %11 = vector.load %arg11[%c1_12, %c0_13] : memref<18x64xf32, #tpu.memory_space<vmem>>, vector<16x64xf32>
    %c1_14 = arith.constant 1 : index
    %c0_15 = arith.constant 0 : index
    %c0_16 = arith.constant 0 : index
    %12 = vector.load %arg2[%c1_14, %c0_15, %c0_16] : memref<3x64x128xf32, #tpu.memory_space<vmem>>, vector<1x64x128xf32>
    %13 = vector.shape_cast %12 : vector<1x64x128xf32> to vector<64x128xf32>
    %cst_17 = arith.constant dense<0.000000e+00> : vector<16x128xf32>
    %14 = tpu.matmul %11, %13, %cst_17 {dimension_numbers = #tpu.dot_dimension_numbers<[1], [0], [0], [1], [0, 0, 1, 1], [], []>} : vector<16x64xf32>, vector<64x128xf32>, vector<16x128xf32> -> vector<16x128xf32>
    %15 = arith.addf %10, %14 : vector<16x128xf32>
    %c2 = arith.constant 2 : index
    %c0_18 = arith.constant 0 : index
    %16 = vector.load %arg11[%c2, %c0_18] : memref<18x64xf32, #tpu.memory_space<vmem>>, vector<16x64xf32>
    %c2_19 = arith.constant 2 : index
    %c0_20 = arith.constant 0 : index
    %c0_21 = arith.constant 0 : index
    %17 = vector.load %arg2[%c2_19, %c0_20, %c0_21] : memref<3x64x128xf32, #tpu.memory_space<vmem>>, vector<1x64x128xf32>
    %18 = vector.shape_cast %17 : vector<1x64x128xf32> to vector<64x128xf32>
    %cst_22 = arith.constant dense<0.000000e+00> : vector<16x128xf32>
    %19 = tpu.matmul %16, %18, %cst_22 {dimension_numbers = #tpu.dot_dimension_numbers<[1], [0], [0], [1], [0, 0, 1, 1], [], []>} : vector<16x64xf32>, vector<64x128xf32>, vector<16x128xf32> -> vector<16x128xf32>
    %20 = arith.addf %15, %19 : vector<16x128xf32>
    %c0_23 = arith.constant 0 : index
    %c0_24 = arith.constant 0 : index
    %21 = vector.load %arg3[%c0_23, %c0_24] : memref<1x128xf32, #tpu.memory_space<vmem>>, vector<1x128xf32>
    %22 = vector.broadcast %21 : vector<1x128xf32> to vector<16x128xf32>
    %23 = arith.addf %20, %22 : vector<16x128xf32>
    %cst_25 = arith.constant 0.000000e+00 : f32
    %24 = vector.broadcast %cst_25 : f32 to vector<16x128xf32>
    %25 = arith.maximumf %23, %24 : vector<16x128xf32>
    %c0_26 = arith.constant 0 : index
    %c0_27 = arith.constant 0 : index
    %c0_28 = arith.constant 0 : index
    %26 = vector.load %arg8[%c0_26, %c0_27, %c0_28] : memref<1x16x128xf32, #tpu.memory_space<vmem>>, vector<1x16x128xf32>
    %27 = vector.shape_cast %26 : vector<1x16x128xf32> to vector<16x128xf32>
    %28 = vector.shape_cast %25 : vector<16x128xf32> to vector<1x16x128xf32>
    tpu.vector_store %arg8[%c0_26, %c0_27, %c0_28], %28 {strides = array<i32>} : memref<1x16x128xf32, #tpu.memory_space<vmem>>, vector<1x16x128xf32>,
    %cst_29 = arith.constant 0.000000e+00 : f32
    %29 = vector.broadcast %cst_29 : f32 to vector<18x128xf32>
    %c0_30 = arith.constant 0 : index
    %c0_31 = arith.constant 0 : index
    %30 = vector.load %arg12[%c0_30, %c0_31] : memref<18x128xf32, #tpu.memory_space<vmem>>, vector<18x128xf32>
    tpu.vector_store %arg12[%c0_30, %c0_31], %29 {strides = array<i32>} : memref<18x128xf32, #tpu.memory_space<vmem>>, vector<18x128xf32>,
    %c1_32 = arith.constant 1 : index
    %c0_33 = arith.constant 0 : index
    %31 = vector.load %arg12[%c1_32, %c0_33] : memref<18x128xf32, #tpu.memory_space<vmem>>, vector<16x128xf32>
    tpu.vector_store %arg12[%c1_32, %c0_33], %25 {strides = array<i32>} : memref<18x128xf32, #tpu.memory_space<vmem>>, vector<16x128xf32>,
    %cst_34 = arith.constant 0.000000e+00 : f32
    %32 = vector.broadcast %cst_34 : f32 to vector<16x128xf32>
    %c0_35 = arith.constant 0 : index
    %c0_36 = arith.constant 0 : index
    %33 = vector.load %arg12[%c0_35, %c0_36] : memref<18x128xf32, #tpu.memory_space<vmem>>, vector<16x128xf32>
    %c0_37 = arith.constant 0 : index
    %c0_38 = arith.constant 0 : index
    %c0_39 = arith.constant 0 : index
    %34 = vector.load %arg4[%c0_37, %c0_38, %c0_39] : memref<3x128x128xf32, #tpu.memory_space<vmem>>, vector<1x128x128xf32>
    %35 = vector.shape_cast %34 : vector<1x128x128xf32> to vector<128x128xf32>
    %cst_40 = arith.constant dense<0.000000e+00> : vector<16x128xf32>
    %36 = tpu.matmul %33, %35, %cst_40 {dimension_numbers = #tpu.dot_dimension_numbers<[1], [0], [0], [1], [0, 0, 1, 1], [], []>} : vector<16x128xf32>, vector<128x128xf32>, vector<16x128xf32> -> vector<16x128xf32>
    %37 = arith.addf %32, %36 : vector<16x128xf32>
    %c1_41 = arith.constant 1 : index
    %c0_42 = arith.constant 0 : index
    %38 = vector.load %arg12[%c1_41, %c0_42] : memref<18x128xf32, #tpu.memory_space<vmem>>, vector<16x128xf32>
    %c1_43 = arith.constant 1 : index
    %c0_44 = arith.constant 0 : index
    %c0_45 = arith.constant 0 : index
    %39 = vector.load %arg4[%c1_43, %c0_44, %c0_45] : memref<3x128x128xf32, #tpu.memory_space<vmem>>, vector<1x128x128xf32>
    %40 = vector.shape_cast %39 : vector<1x128x128xf32> to vector<128x128xf32>
    %cst_46 = arith.constant dense<0.000000e+00> : vector<16x128xf32>
    %41 = tpu.matmul %38, %40, %cst_46 {dimension_numbers = #tpu.dot_dimension_numbers<[1], [0], [0], [1], [0, 0, 1, 1], [], []>} : vector<16x128xf32>, vector<128x128xf32>, vector<16x128xf32> -> vector<16x128xf32>
    %42 = arith.addf %37, %41 : vector<16x128xf32>
    %c2_47 = arith.constant 2 : index
    %c0_48 = arith.constant 0 : index
    %43 = vector.load %arg12[%c2_47, %c0_48] : memref<18x128xf32, #tpu.memory_space<vmem>>, vector<16x128xf32>
    %c2_49 = arith.constant 2 : index
    %c0_50 = arith.constant 0 : index
    %c0_51 = arith.constant 0 : index
    %44 = vector.load %arg4[%c2_49, %c0_50, %c0_51] : memref<3x128x128xf32, #tpu.memory_space<vmem>>, vector<1x128x128xf32>
    %45 = vector.shape_cast %44 : vector<1x128x128xf32> to vector<128x128xf32>
    %cst_52 = arith.constant dense<0.000000e+00> : vector<16x128xf32>
    %46 = tpu.matmul %43, %45, %cst_52 {dimension_numbers = #tpu.dot_dimension_numbers<[1], [0], [0], [1], [0, 0, 1, 1], [], []>} : vector<16x128xf32>, vector<128x128xf32>, vector<16x128xf32> -> vector<16x128xf32>
    %47 = arith.addf %42, %46 : vector<16x128xf32>
    %c0_53 = arith.constant 0 : index
    %c0_54 = arith.constant 0 : index
    %48 = vector.load %arg5[%c0_53, %c0_54] : memref<1x128xf32, #tpu.memory_space<vmem>>, vector<1x128xf32>
    %49 = vector.broadcast %48 : vector<1x128xf32> to vector<16x128xf32>
    %50 = arith.addf %47, %49 : vector<16x128xf32>
    %c0_55 = arith.constant 0 : index
    %c0_56 = arith.constant 0 : index
    %c0_57 = arith.constant 0 : index
    %51 = vector.load %arg9[%c0_55, %c0_56, %c0_57] : memref<1x16x128xf32, #tpu.memory_space<vmem>>, vector<1x16x128xf32>
    %52 = vector.shape_cast %51 : vector<1x16x128xf32> to vector<16x128xf32>
    %53 = vector.shape_cast %50 : vector<16x128xf32> to vector<1x16x128xf32>
    tpu.vector_store %arg9[%c0_55, %c0_56, %c0_57], %53 {strides = array<i32>} : memref<1x16x128xf32, #tpu.memory_space<vmem>>, vector<1x16x128xf32>,
    %cst_58 = arith.constant 0.000000e+00 : f32
    %54 = vector.broadcast %cst_58 : f32 to vector<16x128xf32>
    %55 = arith.maximumf %50, %54 : vector<16x128xf32>
    %cst_59 = arith.constant 0.000000e+00 : f32
    %56 = vector.broadcast %cst_59 : f32 to vector<18x128xf32>
    %c0_60 = arith.constant 0 : index
    %c0_61 = arith.constant 0 : index
    %57 = vector.load %arg13[%c0_60, %c0_61] : memref<18x128xf32, #tpu.memory_space<vmem>>, vector<18x128xf32>
    tpu.vector_store %arg13[%c0_60, %c0_61], %56 {strides = array<i32>} : memref<18x128xf32, #tpu.memory_space<vmem>>, vector<18x128xf32>,
    %c1_62 = arith.constant 1 : index
    %c0_63 = arith.constant 0 : index
    %58 = vector.load %arg13[%c1_62, %c0_63] : memref<18x128xf32, #tpu.memory_space<vmem>>, vector<16x128xf32>
    tpu.vector_store %arg13[%c1_62, %c0_63], %55 {strides = array<i32>} : memref<18x128xf32, #tpu.memory_space<vmem>>, vector<16x128xf32>,
    %cst_64 = arith.constant 0.000000e+00 : f32
    %59 = vector.broadcast %cst_64 : f32 to vector<16x64xf32>
    %c0_65 = arith.constant 0 : index
    %c0_66 = arith.constant 0 : index
    %60 = vector.load %arg13[%c0_65, %c0_66] : memref<18x128xf32, #tpu.memory_space<vmem>>, vector<16x128xf32>
    %c0_67 = arith.constant 0 : index
    %c0_68 = arith.constant 0 : index
    %c0_69 = arith.constant 0 : index
    %61 = vector.load %arg6[%c0_67, %c0_68, %c0_69] : memref<3x128x64xf32, #tpu.memory_space<vmem>>, vector<1x128x64xf32>
    %62 = vector.shape_cast %61 : vector<1x128x64xf32> to vector<128x64xf32>
    %cst_70 = arith.constant dense<0.000000e+00> : vector<16x64xf32>
    %63 = tpu.matmul %60, %62, %cst_70 {dimension_numbers = #tpu.dot_dimension_numbers<[1], [0], [0], [1], [0, 0, 1, 1], [], []>} : vector<16x128xf32>, vector<128x64xf32>, vector<16x64xf32> -> vector<16x64xf32>
    %64 = arith.addf %59, %63 : vector<16x64xf32>
    %c1_71 = arith.constant 1 : index
    %c0_72 = arith.constant 0 : index
    %65 = vector.load %arg13[%c1_71, %c0_72] : memref<18x128xf32, #tpu.memory_space<vmem>>, vector<16x128xf32>
    %c1_73 = arith.constant 1 : index
    %c0_74 = arith.constant 0 : index
    %c0_75 = arith.constant 0 : index
    %66 = vector.load %arg6[%c1_73, %c0_74, %c0_75] : memref<3x128x64xf32, #tpu.memory_space<vmem>>, vector<1x128x64xf32>
    %67 = vector.shape_cast %66 : vector<1x128x64xf32> to vector<128x64xf32>
    %cst_76 = arith.constant dense<0.000000e+00> : vector<16x64xf32>
    %68 = tpu.matmul %65, %67, %cst_76 {dimension_numbers = #tpu.dot_dimension_numbers<[1], [0], [0], [1], [0, 0, 1, 1], [], []>} : vector<16x128xf32>, vector<128x64xf32>, vector<16x64xf32> -> vector<16x64xf32>
    %69 = arith.addf %64, %68 : vector<16x64xf32>
    %c2_77 = arith.constant 2 : index
    %c0_78 = arith.constant 0 : index
    %70 = vector.load %arg13[%c2_77, %c0_78] : memref<18x128xf32, #tpu.memory_space<vmem>>, vector<16x128xf32>
    %c2_79 = arith.constant 2 : index
    %c0_80 = arith.constant 0 : index
    %c0_81 = arith.constant 0 : index
    %71 = vector.load %arg6[%c2_79, %c0_80, %c0_81] : memref<3x128x64xf32, #tpu.memory_space<vmem>>, vector<1x128x64xf32>
    %72 = vector.shape_cast %71 : vector<1x128x64xf32> to vector<128x64xf32>
    %cst_82 = arith.constant dense<0.000000e+00> : vector<16x64xf32>
    %73 = tpu.matmul %70, %72, %cst_82 {dimension_numbers = #tpu.dot_dimension_numbers<[1], [0], [0], [1], [0, 0, 1, 1], [], []>} : vector<16x128xf32>, vector<128x64xf32>, vector<16x64xf32> -> vector<16x64xf32>
    %74 = arith.addf %69, %73 : vector<16x64xf32>
    %c0_83 = arith.constant 0 : index
    %c0_84 = arith.constant 0 : index
    %75 = vector.load %arg7[%c0_83, %c0_84] : memref<1x64xf32, #tpu.memory_space<vmem>>, vector<1x64xf32>
    %76 = vector.broadcast %75 : vector<1x64xf32> to vector<16x64xf32>
    %77 = arith.addf %74, %76 : vector<16x64xf32>
    %c0_85 = arith.constant 0 : index
    %c0_86 = arith.constant 0 : index
    %c0_87 = arith.constant 0 : index
    %78 = vector.load %arg10[%c0_85, %c0_86, %c0_87] : memref<1x16x64xf32, #tpu.memory_space<vmem>>, vector<1x16x64xf32>
    %79 = vector.shape_cast %78 : vector<1x16x64xf32> to vector<16x64xf32>
    %80 = vector.shape_cast %77 : vector<16x64xf32> to vector<1x16x64xf32>
    tpu.vector_store %arg10[%c0_85, %c0_86, %c0_87], %80 {strides = array<i32>} : memref<1x16x64xf32, #tpu.memory_space<vmem>>, vector<1x16x64xf32>,
    return
  }
  func.func @transform_0(%arg0: i32) -> (i32, i32, i32) {
    %c0_i32 = arith.constant 0 : i32
    %c0_i32_0 = arith.constant 0 : i32
    %c0_i32_1 = arith.constant 0 : i32
    return %arg0, %c0_i32, %c0_i32_0 : i32, i32, i32
  }
  func.func @transform_1(%arg0: i32) -> (i32, i32, i32) {
    %c0_i32 = arith.constant 0 : i32
    %c0_i32_0 = arith.constant 0 : i32
    %c0_i32_1 = arith.constant 0 : i32
    %c0_i32_2 = arith.constant 0 : i32
    return %c0_i32, %c0_i32_0, %c0_i32_1 : i32, i32, i32
  }
  func.func @transform_2(%arg0: i32) -> (i32, i32) {
    %c0_i32 = arith.constant 0 : i32
    %c0_i32_0 = arith.constant 0 : i32
    %c0_i32_1 = arith.constant 0 : i32
    return %c0_i32, %c0_i32_0 : i32, i32
  }
  func.func @transform_3(%arg0: i32) -> (i32, i32, i32) {
    %c0_i32 = arith.constant 0 : i32
    %c0_i32_0 = arith.constant 0 : i32
    %c0_i32_1 = arith.constant 0 : i32
    %c0_i32_2 = arith.constant 0 : i32
    return %c0_i32, %c0_i32_0, %c0_i32_1 : i32, i32, i32
  }
  func.func @transform_4(%arg0: i32) -> (i32, i32) {
    %c0_i32 = arith.constant 0 : i32
    %c0_i32_0 = arith.constant 0 : i32
    %c0_i32_1 = arith.constant 0 : i32
    return %c0_i32, %c0_i32_0 : i32, i32
  }
  func.func @transform_5(%arg0: i32) -> (i32, i32, i32) {
    %c0_i32 = arith.constant 0 : i32
    %c0_i32_0 = arith.constant 0 : i32
    %c0_i32_1 = arith.constant 0 : i32
    %c0_i32_2 = arith.constant 0 : i32
    return %c0_i32, %c0_i32_0, %c0_i32_1 : i32, i32, i32
  }
  func.func @transform_6(%arg0: i32) -> (i32, i32) {
    %c0_i32 = arith.constant 0 : i32
    %c0_i32_0 = arith.constant 0 : i32
    %c0_i32_1 = arith.constant 0 : i32
    return %c0_i32, %c0_i32_0 : i32, i32
  }
  func.func @transform_7(%arg0: i32) -> (i32, i32, i32) {
    %c0_i32 = arith.constant 0 : i32
    %c0_i32_0 = arith.constant 0 : i32
    %c0_i32_1 = arith.constant 0 : i32
    return %arg0, %c0_i32, %c0_i32_0 : i32, i32, i32
  }
  func.func @transform_8(%arg0: i32) -> (i32, i32, i32) {
    %c0_i32 = arith.constant 0 : i32
    %c0_i32_0 = arith.constant 0 : i32
    %c0_i32_1 = arith.constant 0 : i32
    return %arg0, %c0_i32, %c0_i32_0 : i32, i32, i32
  }
  func.func @transform_9(%arg0: i32) -> (i32, i32, i32) {
    %c0_i32 = arith.constant 0 : i32
    %c0_i32_0 = arith.constant 0 : i32
    %c0_i32_1 = arith.constant 0 : i32
    return %arg0, %c0_i32, %c0_i32_0 : i32, i32, i32
  }
}

</mosaic_0001>

<bundles_post_ra>
// kernel: tile.14
= control target key start
LH: loop header
LB: loop body
LE: loop exit
PB: predicated region body
PF: predicated region fallthrough
CT: control target
= control target key end

     0   :  { %s28_s0 = inlined_call_operand.vmem [shape: f32[8], index: 0, kind: input, shape index: {}]   ;;  %s29_s1 = inlined_call_operand.vmem [shape: f32[16,8], index: 1, kind: output, shape index: {}]  }
   0x1   :  { %v4_v0 = vld [vmem:[%s28_s0] ss:$0 sm:$0xff] }
   0x2   :  { %5 = vst [vmem:[%s29_s1] sm:$0xff] %v4_v0  ;;  %8 = vst [vmem:[%s29_s1 + $0x8] sm:$0xff] %v4_v0 }

// kernel: tile.15
= control target key start
LH: loop header
LB: loop body
LE: loop exit
PB: predicated region body
PF: predicated region fallthrough
CT: control target
= control target key end

     0   :  { %s133_s10 = smov 120   ;;  %s134_s11 = smov 104   ;;  %vm3_vm0 = vcmask 64512   ;;  %vm9_vm1 = vcmask 1048512   ;;  %vm15_vm2 = vcmask 982912   ;;  %vm21_vm3 = vcmask 917312   ;;  %s209_s0 = inlined_call_operand.vmem [shape: f32[16,8], index: 0, kind: input, shape index: {}]   ;;  %s210_s1 = inlined_call_operand.vmem [shape: f32[1,128], index: 1, kind: output, shape index: {}]  }
   0x1   :  { %v103_v0 = vld [vmem:[%s209_s0 + $0xf] sm:$0x1]   ;;  %v105_v1 = vld [vmem:[%s209_s0 + $0xd] sm:$0x1]   ;;  %v104_v2 = vld [vmem:[%s209_s0 + $0xe] sm:$0x1]  }
   0x2   :  { %7 = vrot.lane.b32.xlu0 %v103_v0, %s133_s10  ;;  %19 = vrot.lane.b32.xlu1 %v105_v1, %s134_s11  ;;  %v106_v3 = vld [vmem:[%s209_s0 + $0xc] sm:$0x1]   ;;  %s135_s16 = smov 112   ;;  %s136_s17 = smov 96   ;;  %v107_v4 = vld [vmem:[%s209_s0 + $0xb] sm:$0x1]  }
   0x3   :  { %v108_v5 = vld [vmem:[%s209_s0 + $0xa] sm:$0x1]   ;;  %v2_v6 = vld [vmem:[%s209_s0] sm:$0x1]   ;;  %s137_s24 = smov 88   ;;  %s138_s25 = smov 80  }
   0x4   :  { %4 = vst.msk [vmem:[#allocation0] sm:$0x1] %vm3_vm0, %v2_v6   ;;  %v109_v7 = vld [vmem:[%s209_s0 + $0x9] sm:$0x1]   ;;  %v110_v8 = vld [vmem:[%s209_s0 + $0x8] sm:$0x1]  }
   0x5   :  { %s139_s30 = smov 72   ;;  %s140_s2 = smov 64   ;;  %v111_v9 = vld [vmem:[%s209_s0 + $0x7] sm:$0x1]   ;;  %v112_v10 = vld [vmem:[%s209_s0 + $0x6] sm:$0x1]  }
   0x6   :  { %13 = vrot.lane.b32.xlu0 %v104_v2, %s135_s16  ;;  %25 = vrot.lane.b32.xlu1 %v106_v3, %s136_s17  ;;  %s141_s7 = smov 56   ;;  %s142_s8 = smov 48   ;;  %v113_v11 = vld [vmem:[%s209_s0 + $0x5] sm:$0x1]   ;;  %v114_v12 = vld [vmem:[%s209_s0 + $0x4] sm:$0x1]  }
   0x7   :  { %s143_s13 = smov 40   ;;  %s144_s14 = smov 32   ;;  %v115_v13 = vld [vmem:[%s209_s0 + $0x3] sm:$0x1]   ;;  %v116_v14 = vld [vmem:[%s209_s0 + $0x2] sm:$0x1]  }
   0x8   :  { %s145_s19 = smov 24   ;;  %s146_s20 = smov 16   ;;  %v117_v15 = vld [vmem:[%s209_s0 + $0x1] sm:$0x1]   ;;  %vm27_vm4 = vcmask 851712   ;;  %vm33_vm5 = vcmask 786112  }
   0x9   :  { %s147_s0 = smov 8   ;;  %vm39_vm6 = vcmask 720512   ;;  %vm45_vm7 = vcmask 654912   ;;  %vm51_vm8 = vcmask 589312   ;;  %vm57_vm9 = vcmask 523712  }
   0xa   :  { %31 = vrot.lane.b32.xlu0 %v107_v4, %s137_s24  ;;  %37 = vrot.lane.b32.xlu1 %v108_v5, %s138_s25  ;;  %vm63_vm10 = vcmask 458112   ;;  %vm69_vm11 = vcmask 392512   ;;  %vm75_vm12 = vcmask 326912   ;;  %vm81_vm13 = vcmask 261312  }
   0xb   :  { %vm87_vm14 = vcmask 195712   ;;  %vm93_vm15 = vcmask 130112  }
   0xe   :  { %43 = vrot.lane.b32.xlu0 %v109_v7, %s139_s30  ;;  %49 = vrot.lane.b32.xlu1 %v110_v8, %s140_s2 }
  0x12   :  { %55 = vrot.lane.b32.xlu0 %v111_v9, %s141_s7  ;;  %61 = vrot.lane.b32.xlu1 %v112_v10, %s142_s8 }
  0x16   :  { %67 = vrot.lane.b32.xlu0 %v113_v11, %s143_s13  ;;  %73 = vrot.lane.b32.xlu1 %v114_v12, %s144_s14 }
  0x1a   :  { %79 = vrot.lane.b32.xlu0 %v115_v13, %s145_s19  ;;  %85 = vrot.lane.b32.xlu1 %v116_v14, %s146_s20 }
  0x1e   :  { %91 = vrot.lane.b32.xlu0 %v117_v15, %s147_s0 }
  0x74   :  { %v8_v16 = vpop.permute.xlu0 %7   ;;  %v20_v17 = vpop.permute.xlu1 %19  }
  0x75   :  { %10 = vst.msk [vmem:[#allocation0] sm:$0x1] %vm9_vm1, %v8_v16  }
  0x78   :  { %v14_v18 = vpop.permute.xlu0 %13   ;;  %v26_v19 = vpop.permute.xlu1 %25  }
  0x79   :  { %16 = vst.msk [vmem:[#allocation0] sm:$0x1] %vm15_vm2, %v14_v18  }
  0x7a   :  { %22 = vst.msk [vmem:[#allocation0] sm:$0x1] %vm21_vm3, %v20_v17  }
  0x7b   :  { %28 = vst.msk [vmem:[#allocation0] sm:$0x1] %vm27_vm4, %v26_v19  }
  0x7c   :  { %v32_v20 = vpop.permute.xlu0 %31   ;;  %v38_v21 = vpop.permute.xlu1 %37  }
  0x7d   :  { %34 = vst.msk [vmem:[#allocation0] sm:$0x1] %vm33_vm5, %v32_v20  }
  0x7e   :  { %40 = vst.msk [vmem:[#allocation0] sm:$0x1] %vm39_vm6, %v38_v21  }
  0x80   :  { %v44_v22 = vpop.permute.xlu0 %43   ;;  %v50_v23 = vpop.permute.xlu1 %49  }
  0x81   :  { %46 = vst.msk [vmem:[#allocation0] sm:$0x1] %vm45_vm7, %v44_v22  }
  0x82   :  { %52 = vst.msk [vmem:[#allocation0] sm:$0x1] %vm51_vm8, %v50_v23  }
  0x84   :  { %v56_v24 = vpop.permute.xlu0 %55   ;;  %v62_v25 = vpop.permute.xlu1 %61  }
  0x85   :  { %58 = vst.msk [vmem:[#allocation0] sm:$0x1] %vm57_vm9, %v56_v24  }
  0x86   :  { %64 = vst.msk [vmem:[#allocation0] sm:$0x1] %vm63_vm10, %v62_v25  }
  0x88   :  { %v68_v26 = vpop.permute.xlu0 %67   ;;  %v74_v27 = vpop.permute.xlu1 %73  }
  0x89   :  { %70 = vst.msk [vmem:[#allocation0] sm:$0x1] %vm69_vm11, %v68_v26  }
  0x8a   :  { %76 = vst.msk [vmem:[#allocation0] sm:$0x1] %vm75_vm12, %v74_v27  }
  0x8c   :  { %v80_v28 = vpop.permute.xlu0 %79   ;;  %v86_v29 = vpop.permute.xlu1 %85  }
  0x8d   :  { %82 = vst.msk [vmem:[#allocation0] sm:$0x1] %vm81_vm13, %v80_v28  }
  0x8e   :  { %88 = vst.msk [vmem:[#allocation0] sm:$0x1] %vm87_vm14, %v86_v29  }
  0x90   :  { %v92_v30 = vpop.permute.xlu0 %91  }
  0x91   :  { %94 = vst.msk [vmem:[#allocation0] sm:$0x1] %vm93_vm15, %v92_v30  }
  0x98   :  { %v99_v31 = vld [vmem:[#allocation0] sm:$0x1] }
  0x99   :  { %102 = vst [vmem:[%s210_s1] sm:$0x1] %v99_v31 }

// kernel: tile.22
= control target key start
LH: loop header
LB: loop body
LE: loop exit
PB: predicated region body
PF: predicated region fallthrough
CT: control target
= control target key end

     0   :  { %s28_s0 = inlined_call_operand.vmem [shape: f32[4], index: 0, kind: input, shape index: {}]   ;;  %s29_s1 = inlined_call_operand.vmem [shape: f32[16,4], index: 1, kind: output, shape index: {}]  }
   0x1   :  { %v4_v0 = vld [vmem:[%s28_s0] ss:$0 sm:$0xff] }
   0x2   :  { %5 = vst [vmem:[%s29_s1] sm:$0xff] %v4_v0  ;;  %8 = vst [vmem:[%s29_s1 + $0x8] sm:$0xff] %v4_v0 }

// kernel: tile.23
= control target key start
LH: loop header
LB: loop body
LE: loop exit
PB: predicated region body
PF: predicated region fallthrough
CT: control target
= control target key end

     0   :  { %s133_s10 = smov 60   ;;  %s134_s11 = smov 52   ;;  %vm3_vm0 = vcmask 31744   ;;  %vm9_vm1 = vcmask 523744   ;;  %vm15_vm2 = vcmask 490944   ;;  %vm21_vm3 = vcmask 458144   ;;  %s209_s0 = inlined_call_operand.vmem [shape: f32[16,4], index: 0, kind: input, shape index: {}]   ;;  %s210_s1 = inlined_call_operand.vmem [shape: f32[1,64], index: 1, kind: output, shape index: {}]  }
   0x1   :  { %v103_v0 = vld [vmem:[%s209_s0 + $0xf] sm:$0x1]   ;;  %v105_v1 = vld [vmem:[%s209_s0 + $0xd] sm:$0x1]   ;;  %v104_v2 = vld [vmem:[%s209_s0 + $0xe] sm:$0x1]  }
   0x2   :  { %7 = vrot.lane.b32.xlu0 %v103_v0, %s133_s10  ;;  %19 = vrot.lane.b32.xlu1 %v105_v1, %s134_s11  ;;  %v106_v3 = vld [vmem:[%s209_s0 + $0xc] sm:$0x1]   ;;  %s135_s16 = smov 56   ;;  %s136_s17 = smov 48   ;;  %v107_v4 = vld [vmem:[%s209_s0 + $0xb] sm:$0x1]  }
   0x3   :  { %v108_v5 = vld [vmem:[%s209_s0 + $0xa] sm:$0x1]   ;;  %v2_v6 = vld [vmem:[%s209_s0] sm:$0x1]   ;;  %s137_s24 = smov 44   ;;  %s138_s25 = smov 40  }
   0x4   :  { %4 = vst.msk [vmem:[#allocation0] sm:$0x1] %vm3_vm0, %v2_v6   ;;  %v109_v7 = vld [vmem:[%s209_s0 + $0x9] sm:$0x1]   ;;  %v110_v8 = vld [vmem:[%s209_s0 + $0x8] sm:$0x1]  }
   0x5   :  { %s139_s30 = smov 36   ;;  %s140_s2 = smov 32   ;;  %v111_v9 = vld [vmem:[%s209_s0 + $0x7] sm:$0x1]   ;;  %v112_v10 = vld [vmem:[%s209_s0 + $0x6] sm:$0x1]  }
   0x6   :  { %13 = vrot.lane.b32.xlu0 %v104_v2, %s135_s16  ;;  %25 = vrot.lane.b32.xlu1 %v106_v3, %s136_s17  ;;  %s141_s7 = smov 28   ;;  %s142_s8 = smov 24   ;;  %v113_v11 = vld [vmem:[%s209_s0 + $0x5] sm:$0x1]   ;;  %v114_v12 = vld [vmem:[%s209_s0 + $0x4] sm:$0x1]  }
   0x7   :  { %s143_s13 = smov 20   ;;  %s144_s14 = smov 16   ;;  %v115_v13 = vld [vmem:[%s209_s0 + $0x3] sm:$0x1]   ;;  %v116_v14 = vld [vmem:[%s209_s0 + $0x2] sm:$0x1]  }
   0x8   :  { %s145_s19 = smov 12   ;;  %s146_s20 = smov 8   ;;  %v117_v15 = vld [vmem:[%s209_s0 + $0x1] sm:$0x1]   ;;  %vm27_vm4 = vcmask 425344   ;;  %vm33_vm5 = vcmask 392544  }
   0x9   :  { %s147_s0 = smov 4   ;;  %vm39_vm6 = vcmask 359744   ;;  %vm45_vm7 = vcmask 326944   ;;  %vm51_vm8 = vcmask 294144   ;;  %vm57_vm9 = vcmask 261344  }
   0xa   :  { %31 = vrot.lane.b32.xlu0 %v107_v4, %s137_s24  ;;  %37 = vrot.lane.b32.xlu1 %v108_v5, %s138_s25  ;;  %vm63_vm10 = vcmask 228544   ;;  %vm69_vm11 = vcmask 195744   ;;  %vm75_vm12 = vcmask 162944   ;;  %vm81_vm13 = vcmask 130144  }
   0xb   :  { %vm87_vm14 = vcmask 97344   ;;  %vm93_vm15 = vcmask 64544  }
   0xe   :  { %43 = vrot.lane.b32.xlu0 %v109_v7, %s139_s30  ;;  %49 = vrot.lane.b32.xlu1 %v110_v8, %s140_s2 }
  0x12   :  { %55 = vrot.lane.b32.xlu0 %v111_v9, %s141_s7  ;;  %61 = vrot.lane.b32.xlu1 %v112_v10, %s142_s8 }
  0x16   :  { %67 = vrot.lane.b32.xlu0 %v113_v11, %s143_s13  ;;  %73 = vrot.lane.b32.xlu1 %v114_v12, %s144_s14 }
  0x1a   :  { %79 = vrot.lane.b32.xlu0 %v115_v13, %s145_s19  ;;  %85 = vrot.lane.b32.xlu1 %v116_v14, %s146_s20 }
  0x1e   :  { %91 = vrot.lane.b32.xlu0 %v117_v15, %s147_s0 }
  0x74   :  { %v8_v16 = vpop.permute.xlu0 %7   ;;  %v20_v17 = vpop.permute.xlu1 %19  }
  0x75   :  { %10 = vst.msk [vmem:[#allocation0] sm:$0x1] %vm9_vm1, %v8_v16  }
  0x78   :  { %v14_v18 = vpop.permute.xlu0 %13   ;;  %v26_v19 = vpop.permute.xlu1 %25  }
  0x79   :  { %16 = vst.msk [vmem:[#allocation0] sm:$0x1] %vm15_vm2, %v14_v18  }
  0x7a   :  { %22 = vst.msk [vmem:[#allocation0] sm:$0x1] %vm21_vm3, %v20_v17  }
  0x7b   :  { %28 = vst.msk [vmem:[#allocation0] sm:$0x1] %vm27_vm4, %v26_v19  }
  0x7c   :  { %v32_v20 = vpop.permute.xlu0 %31   ;;  %v38_v21 = vpop.permute.xlu1 %37  }
  0x7d   :  { %34 = vst.msk [vmem:[#allocation0] sm:$0x1] %vm33_vm5, %v32_v20  }
  0x7e   :  { %40 = vst.msk [vmem:[#allocation0] sm:$0x1] %vm39_vm6, %v38_v21  }
  0x80   :  { %v44_v22 = vpop.permute.xlu0 %43   ;;  %v50_v23 = vpop.permute.xlu1 %49  }
  0x81   :  { %46 = vst.msk [vmem:[#allocation0] sm:$0x1] %vm45_vm7, %v44_v22  }
  0x82   :  { %52 = vst.msk [vmem:[#allocation0] sm:$0x1] %vm51_vm8, %v50_v23  }
  0x84   :  { %v56_v24 = vpop.permute.xlu0 %55   ;;  %v62_v25 = vpop.permute.xlu1 %61  }
  0x85   :  { %58 = vst.msk [vmem:[#allocation0] sm:$0x1] %vm57_vm9, %v56_v24  }
  0x86   :  { %64 = vst.msk [vmem:[#allocation0] sm:$0x1] %vm63_vm10, %v62_v25  }
  0x88   :  { %v68_v26 = vpop.permute.xlu0 %67   ;;  %v74_v27 = vpop.permute.xlu1 %73  }
  0x89   :  { %70 = vst.msk [vmem:[#allocation0] sm:$0x1] %vm69_vm11, %v68_v26  }
  0x8a   :  { %76 = vst.msk [vmem:[#allocation0] sm:$0x1] %vm75_vm12, %v74_v27  }
  0x8c   :  { %v80_v28 = vpop.permute.xlu0 %79   ;;  %v86_v29 = vpop.permute.xlu1 %85  }
  0x8d   :  { %82 = vst.msk [vmem:[#allocation0] sm:$0x1] %vm81_vm13, %v80_v28  }
  0x8e   :  { %88 = vst.msk [vmem:[#allocation0] sm:$0x1] %vm87_vm14, %v86_v29  }
  0x90   :  { %v92_v30 = vpop.permute.xlu0 %91  }
  0x91   :  { %94 = vst.msk [vmem:[#allocation0] sm:$0x1] %vm93_vm15, %v92_v30  }
  0x98   :  { %v99_v31 = vld [vmem:[#allocation0] sm:$0x1] }
  0x99   :  { %102 = vst [vmem:[%s210_s1] sm:$0x1] %v99_v31 }

// kernel: _lambda_.1
= control target key start
LH: loop header
LB: loop body
LE: loop exit
PB: predicated region body
PF: predicated region fallthrough
CT: control target
= control target key end

     0   :  { %s1959_s30 = smov 0   ;;  %s2375_s0 = inlined_call_operand.vmem [shape: f32[2,16,64], index: 0, kind: input, shape index: {}]   ;;  %s2376_s1 = inlined_call_operand.vmem [shape: f32[3,64,128], index: 1, kind: input, shape index: {}]   ;;  %s2377_s2 = inlined_call_operand.vmem [shape: f32[1,128], index: 2, kind: input, shape index: {}]   ;;  %s2378_s3 = inlined_call_operand.vmem [shape: f32[3,128,128], index: 3, kind: input, shape index: {}]   ;;  %s2379_s4 = inlined_call_operand.vmem [shape: f32[1,128], index: 4, kind: input, shape index: {}]   ;;  %s2380_s5 = inlined_call_operand.vmem [shape: f32[3,128,64], index: 5, kind: input, shape index: {}]   ;;  %s2381_s6 = inlined_call_operand.vmem [shape: f32[1,64], index: 6, kind: input, shape index: {}]   ;;  %s2382_s7 = inlined_call_operand.vmem [shape: f32[2,16,128], index: 7, kind: output, shape index: {0}]   ;;  %s2383_s8 = inlined_call_operand.vmem [shape: f32[2,16,128], index: 8, kind: output, shape index: {1}]   ;;  %s2384_s9 = inlined_call_operand.vmem [shape: f32[2,16,64], index: 9, kind: output, shape index: {2}]  }
   0x1 LB: > { %s1378_s10 = sadd.s32 4294967295, %s1906_s30   ;;  %p1382_p0 = scmp.ge.s32.totalorder %s1906_s30, 1  ;;  %s1906_s30 = sphi %s1959_s30, %s20_s30  }
   0x2   : > { %p292_p1 = scmp.lt.s32.totalorder %s1906_s30, 3 }
   0x4   : > { %p293_p2 = pnand %p1382_p0, %p292_p1 }
   0x5   : > { %p1976_p3 = scmp.lt.s32.totalorder (!%p293_p2), %s1378_s10, 1 }
   0x6   : > { %296 = sbr.rel (%p293_p2) target bundleno = 716 (0x2cc), region = 48 }
   0xb   : > { %v1398_v0 = vld [vmem:[%s2376_s1 + $0x78] sm:$0xff]  ;;  %v1397_v2 = vld [vmem:[%s2376_s1 + $0x70] sm:$0xff]  ;;  %vm360_vm0 = vcmask 523264   ;;  %v1908_v4 = vmov 0.0   ;;  %vm363_vm1 = vcmask 517120   ;;  %v1396_v5 = vld [vmem:[%s2376_s1 + $0x68] sm:$0xff] }
   0xc   : > { %v376_v1 = vld [vmem:[%s2376_s1 + $0x38] sm:$0xff]  ;;  %1624 = vmatprep.subr.mxu0 %v1398_v0  ;;  %v375_v3 = vld [vmem:[%s2376_s1 + $0x30] sm:$0xff]  ;;  %361 = vst.msk [vmem:[#allocation2] sm:$0xff] %vm360_vm0, %v1908_v4  ;;  %362 = vst.msk [vmem:[#allocation2 + $0x8] sm:$0xff] %vm360_vm0, %v1908_v4  ;;  %s2387_s10 = smov (!%p1976_p3, %s1378_s10), 1 }
   0xd   : > { %1643 = vmatprep.subr.mxu1 %v376_v1  ;;  %657 = vst [vmem:[#allocation3] sm:$0xff] %v1908_v4  ;;  %658 = vst [vmem:[#allocation3 + $0x8] sm:$0xff] %v1908_v4  ;;  %1625 = vmatpush3.msra.mxu0 %v1398_v0  ;;  %v374_v6 = vld [vmem:[%s2376_s1 + $0x28] sm:$0xff]  ;;  %v1395_v7 = vld [vmem:[%s2376_s1 + $0x60] sm:$0xff]  ;;  %s1999_s28 = sshll.u32 %s2387_s10, 4 }
   0xe   : > { %659 = vst [vmem:[#allocation3 + $0x10] sm:$0x3] %v1908_v4  ;;  %958 = vst [vmem:[#allocation4] sm:$0xff] %v1908_v4  ;;  %1644 = vmatpush3.msra.mxu1 %v376_v1  ;;  %1626 = vmatprep.subr.mxu0 %v1397_v2  ;;  %v373_v8 = vld [vmem:[%s2376_s1 + $0x20] sm:$0xff]  ;;  %v1394_v9 = vld [vmem:[%s2376_s1 + $0x58] sm:$0xff]  ;;  %s342_s14 = scalar_lea.vmem %s2375_s0, %s1999_s28  ;;  %s347_s19 = scalar_lea.vmem %s2382_s7, %s1999_s28 }
   0xf   : > { %959 = vst [vmem:[#allocation4 + $0x8] sm:$0xff] %v1908_v4  ;;  %960 = vst [vmem:[#allocation4 + $0x10] sm:$0x3] %v1908_v4  ;;  %1645 = vmatprep.subr.mxu1 %v375_v3  ;;  %1627 = vmatpush3.msra.mxu0 %v1397_v2  ;;  %v372_v10 = vld [vmem:[%s2376_s1 + $0x18] sm:$0xff]  ;;  %v358_v11 = vld [vmem:[%s342_s14] sm:$0xff]  ;;  %s352_s25 = scalar_lea.vmem %s2383_s8, %s1999_s28  ;;  %s357_s22 = scalar_lea.vmem %s2384_s9, %s1999_s28 }
  0x10   : > { %364 = vst.msk [vmem:[#allocation2 + $0x10] sm:$0x3] %vm363_vm1, %v1908_v4  ;;  %1646 = vmatpush3.msra.mxu1 %v375_v3  ;;  %1628 = vmatprep.subr.mxu0 %v1396_v5  ;;  %v359_v12 = vld [vmem:[%s342_s14 + $0x8] sm:$0xff]  ;;  %v1393_v13 = vld [vmem:[%s2376_s1 + $0x50] sm:$0xff]  ;;  %v1391_v17 = vld [vmem:[%s2376_s1 + $0x40] sm:$0xff] }
  0x11   : > { %1647 = vmatprep.subr.mxu1 %v374_v6  ;;  %1629 = vmatpush3.msra.mxu0 %v1396_v5  ;;  %365 = vst.msk [vmem:[#allocation2 + $0x1] sm:$0xff] %vm360_vm0, %v358_v11  ;;  %366 = vst.msk [vmem:[#allocation2 + $0x9] sm:$0xff] %vm360_vm0, %v359_v12  ;;  %v371_v14 = vld [vmem:[%s2376_s1 + $0x10] sm:$0xff]  ;;  %v1392_v15 = vld [vmem:[%s2376_s1 + $0x48] sm:$0xff] }
  0x12   : > { %1648 = vmatpush3.msra.mxu1 %v374_v6  ;;  %1630 = vmatprep.subr.mxu0 %v1395_v7  ;;  %v370_v16 = vld [vmem:[%s2376_s1 + $0x8] sm:$0xff]  ;;  %v369_v18 = vld [vmem:[%s2376_s1] sm:$0xff]  ;;  %v1410_v23 = vld [vmem:[%s2376_s1 + $0xb8] sm:$0xff] }
  0x13   : > { %1649 = vmatprep.subr.mxu1 %v373_v8  ;;  %1631 = vmatpush3.msra.mxu0 %v1395_v7  ;;  %v1409_v25 = vld [vmem:[%s2376_s1 + $0xb0] sm:$0xff]  ;;  %v1408_v26 = vld [vmem:[%s2376_s1 + $0xa8] sm:$0xff]  ;;  %v1407_v27 = vld [vmem:[%s2376_s1 + $0xa0] sm:$0xff] }
  0x14   : > { %1650 = vmatpush3.msra.mxu1 %v373_v8  ;;  %1632 = vmatprep.subr.mxu0 %v1394_v9  ;;  %v1406_v28 = vld [vmem:[%s2376_s1 + $0x98] sm:$0xff]  ;;  %v1405_v29 = vld [vmem:[%s2376_s1 + $0x90] sm:$0xff]  ;;  %v1404_v30 = vld [vmem:[%s2376_s1 + $0x88] sm:$0xff] }
  0x15   : > { %1651 = vmatprep.subr.mxu1 %v372_v10  ;;  %1633 = vmatpush3.msra.mxu0 %v1394_v9  ;;  %v1403_v31 = vld [vmem:[%s2376_s1 + $0x80] sm:$0xff]  ;;  %v1429_v33 = vld [vmem:[%s2378_s3 + $0xf8] sm:$0xff]  ;;  %v1428_v34 = vld [vmem:[%s2378_s3 + $0xf0] sm:$0xff] }
  0x16   : > { %1652 = vmatpush3.msra.mxu1 %v372_v10  ;;  %1634 = vmatprep.subr.mxu0 %v1393_v13  ;;  %v1427_v35 = vld [vmem:[%s2378_s3 + $0xe8] sm:$0xff]  ;;  %v1426_v36 = vld [vmem:[%s2378_s3 + $0xe0] sm:$0xff]  ;;  %v1425_v37 = vld [vmem:[%s2378_s3 + $0xd8] sm:$0xff] }
  0x17   : > { %1653 = vmatprep.subr.mxu1 %v371_v14  ;;  %1635 = vmatpush3.msra.mxu0 %v1393_v13  ;;  %v679_v38 = vld [vmem:[%s2378_s3 + $0x78] sm:$0xff]  ;;  %v678_v39 = vld [vmem:[%s2378_s3 + $0x70] sm:$0xff]  ;;  %v677_v40 = vld [vmem:[%s2378_s3 + $0x68] sm:$0xff] }
  0x18   : > { %1654 = vmatpush3.msra.mxu1 %v371_v14  ;;  %1636 = vmatprep.subr.mxu0 %v1392_v15  ;;  %v377_v19 = vld [vmem:[#allocation2 + $0x1] sm:$0xff]  ;;  %v378_v21 = vld [vmem:[#allocation2 + $0x9] sm:$0xff]  ;;  %v675_v45 = vld [vmem:[%s2378_s3 + $0x58] sm:$0xff] }
  0x19   : > { %1655 = vmatprep.subr.mxu1 %v370_v16  ;;  %1637 = vmatpush3.msra.mxu0 %v1392_v15  ;;  %v367_v20 = vld [vmem:[#allocation2] sm:$0xff]  ;;  %v368_v22 = vld [vmem:[#allocation2 + $0x8] sm:$0xff]  ;;  %v1424_v41 = vld [vmem:[%s2378_s3 + $0xd0] sm:$0xff] }
  0x1a   : > { %1656 = vmatpush3.msra.mxu1 %v370_v16  ;;  %1638 = vmatprep.subr.mxu0 %v1391_v17  ;;  %v550_v24 = vld [vmem:[#allocation2 + $0x2] sm:$0xff]  ;;  %v551_v32 = vld [vmem:[#allocation2 + $0xa] sm:$0xff]  ;;  %v1421_v46 = vld [vmem:[%s2378_s3 + $0xb8] sm:$0xff] }
  0x1b   : > { %1657 = vmatprep.subr.mxu1 %v369_v18  ;;  %1639 = vmatpush3.msra.mxu0 %v1391_v17  ;;  %v1423_v42 = vld [vmem:[%s2378_s3 + $0xc8] sm:$0xff]  ;;  %v676_v43 = vld [vmem:[%s2378_s3 + $0x60] sm:$0xff]  ;;  %v674_v47 = vld [vmem:[%s2378_s3 + $0x50] sm:$0xff] }
  0x1c   : > { %1640 = vmatprep.mubr.msk.f32.mxu0 %vm360_vm0, %v377_v19  ;;  %1658 = vmatpush3.msra.mxu1 %v369_v18  ;;  %v1422_v44 = vld [vmem:[%s2378_s3 + $0xc0] sm:$0xff]  ;;  %v1420_v48 = vld [vmem:[%s2378_s3 + $0xb0] sm:$0xff]  ;;  %v673_v49 = vld [vmem:[%s2378_s3 + $0x48] sm:$0xff] }
  0x1d   : > { %1659 = vmatprep.mubr.msk.f32.mxu1 %vm360_vm0, %v367_v20  ;;  %1641 = vmatmul.mubr.msk.f32.vlgmr.msra.gmra.mxu0 %vm360_vm0, %v378_v21  ;;  %v1419_v50 = vld [vmem:[%s2378_s3 + $0xa8] sm:$0xff]  ;;  %v1418_v51 = vld [vmem:[%s2378_s3 + $0xa0] sm:$0xff]  ;;  %v1417_v53 = vld [vmem:[%s2378_s3 + $0x98] sm:$0xff] }
  0x1e   : > { %1660 = vmatmul.mubr.msk.f32.vlgmr.msra.gmra.mxu1 %vm360_vm0, %v368_v22  ;;  %1662 = vmatprep.subr.mxu0 %v1410_v23  ;;  %v672_v52 = vld [vmem:[%s2378_s3 + $0x40] sm:$0xff]  ;;  %v671_v54 = vld [vmem:[%s2378_s3 + $0x38] sm:$0xff]  ;;  %v1416_v55 = vld [vmem:[%s2378_s3 + $0x90] sm:$0xff] }
  0x1f   : > { %1678 = vmatprep.mubr.msk.f32.mxu0 %vm360_vm0, %v550_v24  ;;  %1663 = vmatpush3.msra.mxu0 %v1410_v23  ;;  %v670_v56 = vld [vmem:[%s2378_s3 + $0x30] sm:$0xff]  ;;  %v1415_v57 = vld [vmem:[%s2378_s3 + $0x88] sm:$0xff]  ;;  %v1414_v59 = vld [vmem:[%s2378_s3 + $0x80] sm:$0xff] }
  0x20   : > { %1664 = vmatprep.subr.mxu0 %v1409_v25  ;;  %1681 = vmatprep.subr.mxu1 %v1429_v33  ;;  %v669_v58 = vld [vmem:[%s2378_s3 + $0x28] sm:$0xff]  ;;  %v668_v60 = vld [vmem:[%s2378_s3 + $0x20] sm:$0xff]  ;;  %v1445_v61 = vld [vmem:[%s2378_s3 + $0x178] sm:$0xff] }
  0x21   : > { %1665 = vmatpush3.msra.mxu0 %v1409_v25  ;;  %1682 = vmatpush3.msra.mxu1 %v1429_v33  ;;  %v667_v62 = vld [vmem:[%s2378_s3 + $0x18] sm:$0xff]  ;;  %v666_v63 = vld [vmem:[%s2378_s3 + $0x10] sm:$0xff]  ;;  %v665_v0 = vld [vmem:[%s2378_s3 + $0x8] sm:$0xff] }
  0x22   : > { %1666 = vmatprep.subr.mxu0 %v1408_v26  ;;  %1683 = vmatprep.subr.mxu1 %v1428_v34  ;;  %v664_v1 = vld [vmem:[%s2378_s3] sm:$0xff]  ;;  %v1444_v17 = vld [vmem:[%s2378_s3 + $0x170] sm:$0xff]  ;;  %v1443_v18 = vld [vmem:[%s2378_s3 + $0x168] sm:$0xff] }
  0x23   : > { %1667 = vmatpush3.msra.mxu0 %v1408_v26  ;;  %1684 = vmatpush3.msra.mxu1 %v1428_v34  ;;  %v1413_v8 = vld [vmem:[%s2377_s2] ss:$0 sm:$0xff]  ;;  %v1441_v20 = vld [vmem:[%s2378_s3 + $0x158] sm:$0xff]  ;;  %v1440_v24 = vld [vmem:[%s2378_s3 + $0x150] sm:$0xff] }
  0x24   : > { %1668 = vmatprep.subr.mxu0 %v1407_v27  ;;  %1685 = vmatprep.subr.mxu1 %v1427_v35  ;;  %v1442_v19 = vld [vmem:[%s2378_s3 + $0x160] sm:$0xff]  ;;  %v1439_v25 = vld [vmem:[%s2378_s3 + $0x148] sm:$0xff] }
  0x25   : > { %1669 = vmatpush3.msra.mxu0 %v1407_v27  ;;  %1686 = vmatpush3.msra.mxu1 %v1427_v35  ;;  %v1438_v26 = vld [vmem:[%s2378_s3 + $0x140] sm:$0xff]  ;;  %v1437_v27 = vld [vmem:[%s2378_s3 + $0x138] sm:$0xff]  ;;  %v1431_v33 = vld [vmem:[%s2378_s3 + $0x108] sm:$0xff] }
  0x26   : > { %1670 = vmatprep.subr.mxu0 %v1406_v28  ;;  %1687 = vmatprep.subr.mxu1 %v1426_v36  ;;  %v1430_v34 = vld [vmem:[%s2378_s3 + $0x100] sm:$0xff] }
  0x27   : > { %1671 = vmatpush3.msra.mxu0 %v1406_v28  ;;  %1688 = vmatpush3.msra.mxu1 %v1426_v36  ;;  %v1436_v28 = vld [vmem:[%s2378_s3 + $0x130] sm:$0xff]  ;;  %v1462_v36 = vld [vmem:[%s2380_s5 + $0xf8] sm:$0xff] }
  0x28   : > { %1672 = vmatprep.subr.mxu0 %v1405_v29  ;;  %1689 = vmatprep.subr.mxu1 %v1425_v37 }
  0x29   : > { %1673 = vmatpush3.msra.mxu0 %v1405_v29  ;;  %1690 = vmatpush3.msra.mxu1 %v1425_v37  ;;  %v1435_v29 = vld [vmem:[%s2378_s3 + $0x128] sm:$0xff]  ;;  %v980_v37 = vld [vmem:[%s2380_s5 + $0x78] sm:$0xff] }
  0x2a   : > { %1674 = vmatprep.subr.mxu0 %v1404_v30  ;;  %1691 = vmatprep.subr.mxu1 %v1424_v41 }
  0x2b   : > { %1675 = vmatpush3.msra.mxu0 %v1404_v30  ;;  %1692 = vmatpush3.msra.mxu1 %v1424_v41  ;;  %v1434_v30 = vld [vmem:[%s2378_s3 + $0x120] sm:$0xff]  ;;  %v978_v41 = vld [vmem:[%s2380_s5 + $0x68] sm:$0xff] }
  0x2c   : > { %1676 = vmatprep.subr.mxu0 %v1403_v31  ;;  %1693 = vmatprep.subr.mxu1 %v1423_v42 }
  0x2d   : > { %1677 = vmatpush3.msra.mxu0 %v1403_v31  ;;  %1694 = vmatpush3.msra.mxu1 %v1423_v42  ;;  %v1433_v31 = vld [vmem:[%s2378_s3 + $0x118] sm:$0xff]  ;;  %v1459_v42 = vld [vmem:[%s2380_s5 + $0xe0] sm:$0xff] }
  0x2e   : > { %1679 = vmatmul.mubr.msk.f32.vlgmr.msra.gmra.mxu0 %vm360_vm0, %v551_v32  ;;  %1716 = vmatprep.subr.mxu0 %v679_v38  ;;  %v1432_v32 = vld [vmem:[%s2378_s3 + $0x110] sm:$0xff] }
  0x2f   : > { %1717 = vmatpush3.msra.mxu0 %v679_v38  ;;  %1695 = vmatprep.subr.mxu1 %v1422_v44  ;;  %v1461_v38 = vld [vmem:[%s2380_s5 + $0xf0] sm:$0xff] }
  0x30   : > { %1718 = vmatprep.subr.mxu0 %v678_v39  ;;  %1696 = vmatpush3.msra.mxu1 %v1422_v44  ;;  %v1458_v44 = vld [vmem:[%s2380_s5 + $0xd8] sm:$0xff] }
  0x31   : > { %1719 = vmatpush3.msra.mxu0 %v678_v39  ;;  %1697 = vmatprep.subr.mxu1 %v1421_v46  ;;  %v979_v39 = vld [vmem:[%s2380_s5 + $0x70] sm:$0xff] }
  0x32   : > { %1720 = vmatprep.subr.mxu0 %v677_v40  ;;  %1698 = vmatpush3.msra.mxu1 %v1421_v46  ;;  %v1457_v46 = vld [vmem:[%s2380_s5 + $0xd0] sm:$0xff] }
  0x33   : > { %1721 = vmatpush3.msra.mxu0 %v677_v40  ;;  %1699 = vmatprep.subr.mxu1 %v1420_v48  ;;  %v1460_v40 = vld [vmem:[%s2380_s5 + $0xe8] sm:$0xff] }
  0x34   : > { %1722 = vmatprep.subr.mxu0 %v676_v43  ;;  %1700 = vmatpush3.msra.mxu1 %v1420_v48  ;;  %v1456_v48 = vld [vmem:[%s2380_s5 + $0xc8] sm:$0xff] }
  0x35   : > { %1723 = vmatpush3.msra.mxu0 %v676_v43  ;;  %1701 = vmatprep.subr.mxu1 %v1419_v50  ;;  %v977_v43 = vld [vmem:[%s2380_s5 + $0x60] sm:$0xff] }
  0x36   : > { %1724 = vmatprep.subr.mxu0 %v675_v45  ;;  %1702 = vmatpush3.msra.mxu1 %v1419_v50  ;;  %v1455_v50 = vld [vmem:[%s2380_s5 + $0xc0] sm:$0xff] }
  0x37   : > { %1725 = vmatpush3.msra.mxu0 %v675_v45  ;;  %1703 = vmatprep.subr.mxu1 %v1418_v51  ;;  %v976_v45 = vld [vmem:[%s2380_s5 + $0x58] sm:$0xff] }
  0x38   : > { %1726 = vmatprep.subr.mxu0 %v674_v47  ;;  %1704 = vmatpush3.msra.mxu1 %v1418_v51  ;;  %v1454_v51 = vld [vmem:[%s2380_s5 + $0xb8] sm:$0xff] }
  0x39   : > { %1727 = vmatpush3.msra.mxu0 %v674_v47  ;;  %1705 = vmatprep.subr.mxu1 %v1417_v53  ;;  %v975_v47 = vld [vmem:[%s2380_s5 + $0x50] sm:$0xff] }
  0x3a   : > { %1728 = vmatprep.subr.mxu0 %v673_v49  ;;  %1706 = vmatpush3.msra.mxu1 %v1417_v53  ;;  %v1452_v53 = vld [vmem:[%s2380_s5 + $0xa8] sm:$0xff] }
  0x3b   : > { %1729 = vmatpush3.msra.mxu0 %v673_v49  ;;  %1707 = vmatprep.subr.mxu1 %v1416_v55  ;;  %v974_v49 = vld [vmem:[%s2380_s5 + $0x48] sm:$0xff] }
  0x3c   : > { %1730 = vmatprep.subr.mxu0 %v672_v52  ;;  %1708 = vmatpush3.msra.mxu1 %v1416_v55  ;;  %v973_v55 = vld [vmem:[%s2380_s5 + $0x40] sm:$0xff] }
  0x3d   : > { %1731 = vmatpush3.msra.mxu0 %v672_v52  ;;  %1709 = vmatprep.subr.mxu1 %v1415_v57  ;;  %v1453_v52 = vld [vmem:[%s2380_s5 + $0xb0] sm:$0xff] }
  0x3e   : > { %1732 = vmatprep.subr.mxu0 %v671_v54  ;;  %1710 = vmatpush3.msra.mxu1 %v1415_v57  ;;  %v972_v57 = vld [vmem:[%s2380_s5 + $0x38] sm:$0xff] }
  0x3f   : > { %1733 = vmatpush3.msra.mxu0 %v671_v54  ;;  %1711 = vmatprep.subr.mxu1 %v1414_v59  ;;  %v1451_v54 = vld [vmem:[%s2380_s5 + $0xa0] sm:$0xff] }
  0x40   : > { %1734 = vmatprep.subr.mxu0 %v670_v56  ;;  %1712 = vmatpush3.msra.mxu1 %v1414_v59  ;;  %v971_v59 = vld [vmem:[%s2380_s5 + $0x30] sm:$0xff] }
  0x41   : > { %1735 = vmatpush3.msra.mxu0 %v670_v56  ;;  %1751 = vmatprep.subr.mxu1 %v1445_v61  ;;  %v1450_v56 = vld [vmem:[%s2380_s5 + $0x98] sm:$0xff] }
  0x42   : > { %1736 = vmatprep.subr.mxu0 %v669_v58 }
  0x43   : > { %1737 = vmatpush3.msra.mxu0 %v669_v58  ;;  %v1449_v58 = vld [vmem:[%s2380_s5 + $0x90] sm:$0xff] }
  0x44   : > { %1738 = vmatprep.subr.mxu0 %v668_v60 }
  0x45   : > { %1739 = vmatpush3.msra.mxu0 %v668_v60  ;;  %v1448_v60 = vld [vmem:[%s2380_s5 + $0x88] sm:$0xff] }
  0x46   : > { %1740 = vmatprep.subr.mxu0 %v667_v62 }
  0x47   : > { %1741 = vmatpush3.msra.mxu0 %v667_v62  ;;  %v1447_v62 = vld [vmem:[%s2380_s5 + $0x80] sm:$0xff] }
  0x48   : > { %1742 = vmatprep.subr.mxu0 %v666_v63 }
  0x49   : > { %1743 = vmatpush3.msra.mxu0 %v666_v63  ;;  %v969_v63 = vld [vmem:[%s2380_s5 + $0x20] sm:$0xff] }
  0x4a   : > { %1744 = vmatprep.subr.mxu0 %v665_v0 }
  0x4b   : > { %1745 = vmatpush3.msra.mxu0 %v665_v0  ;;  %v1478_v0 = vld [vmem:[%s2380_s5 + $0x178] sm:$0xff] }
  0x4c   : > { %1746 = vmatprep.subr.mxu0 %v664_v1 }
  0x4d   : > { %1747 = vmatpush3.msra.mxu0 %v664_v1  ;;  %v968_v1 = vld [vmem:[%s2380_s5 + $0x18] sm:$0xff] }
  0x4e   : > { %1786 = vmatprep.subr.mxu0 %v1462_v36 }
  0xdd   : > { %v1642_v2 = vpop.f32.mrf.mxu0 }
  0xde   : > { %v1661_v3 = vpop.f32.mrf.mxu1 }
  0xdf   : > { %v460_v4 = vpop.f32.mrf.mxu0  ;;  %v547_v6 = vadd.f32 %v1661_v3, %v1642_v2  ;;  %v967_v2 = vld [vmem:[%s2380_s5 + $0x10] sm:$0xff]  ;;  %v966_v3 = vld [vmem:[%s2380_s5 + $0x8] sm:$0xff] }
  0xe0   : > { %v541_v5 = vpop.f32.mrf.mxu1 }
  0xe1   : > { %v542_v9 = vadd.f32 %v541_v5, %v460_v4  ;;  %v965_v4 = vld [vmem:[%s2380_s5] sm:$0xff] }
  0xee   : > { %v1680_v7 = vpop.f32.mrf.mxu0 }
  0xef   : > { %v643_v10 = vadd.f32 %v1680_v7, %v547_v6 }
  0xf0   : > { %v633_v11 = vpop.f32.mrf.mxu0 }
  0xf1   : > { %v652_v12 = vadd.f32 %v1413_v8, %v643_v10  ;;  %v642_v13 = vadd.f32 %v633_v11, %v542_v9  ;;  %v1446_v11 = vld [vmem:[%s2379_s4] ss:$0 sm:$0xff] }
  0xf3   : > { %v654_v14 = vmax.f32 %v652_v12, 0.0  ;;  %v651_v15 = vadd.f32 %v1413_v8, %v642_v13 }
  0xf5   : > { %656 = vst [vmem:[%s347_s19 + $0x8] sm:$0xff] %v654_v14  ;;  %661 = vst [vmem:[#allocation3 + $0x9] sm:$0xff] %v654_v14  ;;  %v653_v16 = vmax.f32 %v651_v15, 0.0 }
  0xf7   : > { %655 = vst [vmem:[%s347_s19] sm:$0xff] %v653_v16  ;;  %660 = vst [vmem:[#allocation3 + $0x1] sm:$0xff] %v653_v16  ;;  %1713 = vmatprep.mubr.f32.mxu1 %v653_v16 }
  0xf8   : > { %1714 = vmatmul.mubr.f32.vlgmr.msra.gmra.mxu1 %v654_v14 }
  0xf9   : > { %1752 = vmatpush3.msra.mxu1 %v1445_v61  ;;  %v970_v61 = vld [vmem:[%s2380_s5 + $0x28] sm:$0xff] }
  0xfa   : > { %1753 = vmatprep.subr.mxu1 %v1444_v17 }
  0xfb   : > { %1754 = vmatpush3.msra.mxu1 %v1444_v17 }
  0xfc   : > { %1755 = vmatprep.subr.mxu1 %v1443_v18  ;;  %v850_v35 = vld [vmem:[#allocation3 + $0xa] sm:$0xff] }
  0xfd   : > { %1756 = vmatpush3.msra.mxu1 %v1443_v18 }
  0xfe   : > { %v662_v21 = vld [vmem:[#allocation3] sm:$0xff]  ;;  %v663_v22 = vld [vmem:[#allocation3 + $0x8] sm:$0xff]  ;;  %1757 = vmatprep.subr.mxu1 %v1442_v19 }
  0xff   : > { %v849_v23 = vld [vmem:[#allocation3 + $0x2] sm:$0xff]  ;;  %1748 = vmatprep.mubr.f32.mxu0 %v662_v21  ;;  %1758 = vmatpush3.msra.mxu1 %v1442_v19  ;;  %v1476_v21 = vld [vmem:[%s2380_s5 + $0x168] sm:$0xff] }
 0x100   : > { %1783 = vmatprep.mubr.f32.mxu1 %v849_v23  ;;  %1749 = vmatmul.mubr.f32.vlgmr.msra.gmra.mxu0 %v663_v22  ;;  %v1475_v22 = vld [vmem:[%s2380_s5 + $0x160] sm:$0xff]  ;;  %v1474_v23 = vld [vmem:[%s2380_s5 + $0x158] sm:$0xff] }
 0x101   : > { %1759 = vmatprep.subr.mxu1 %v1441_v20  ;;  %1787 = vmatpush3.msra.mxu0 %v1462_v36  ;;  %v1464_v36 = vld [vmem:[%s2380_s5 + $0x108] sm:$0xff] }
 0x102   : > { %1760 = vmatpush3.msra.mxu1 %v1441_v20  ;;  %1788 = vmatprep.subr.mxu0 %v1461_v38  ;;  %v1477_v20 = vld [vmem:[%s2380_s5 + $0x170] sm:$0xff] }
 0x103   : > { %1761 = vmatprep.subr.mxu1 %v1440_v24  ;;  %1789 = vmatpush3.msra.mxu0 %v1461_v38 }
 0x104   : > { %1762 = vmatpush3.msra.mxu1 %v1440_v24  ;;  %1790 = vmatprep.subr.mxu0 %v1460_v40 }
 0x105   : > { %1763 = vmatprep.subr.mxu1 %v1439_v25  ;;  %1791 = vmatpush3.msra.mxu0 %v1460_v40 }
 0x106   : > { %1764 = vmatpush3.msra.mxu1 %v1439_v25  ;;  %1792 = vmatprep.subr.mxu0 %v1459_v42 }
 0x107   : > { %1765 = vmatprep.subr.mxu1 %v1438_v26  ;;  %1793 = vmatpush3.msra.mxu0 %v1459_v42 }
 0x108   : > { %1766 = vmatpush3.msra.mxu1 %v1438_v26  ;;  %1794 = vmatprep.subr.mxu0 %v1458_v44 }
 0x109   : > { %1767 = vmatprep.subr.mxu1 %v1437_v27  ;;  %1795 = vmatpush3.msra.mxu0 %v1458_v44 }
 0x10a   : > { %1768 = vmatpush3.msra.mxu1 %v1437_v27  ;;  %1796 = vmatprep.subr.mxu0 %v1457_v46  ;;  %v1473_v27 = vld [vmem:[%s2380_s5 + $0x150] sm:$0xff] }
 0x10b   : > { %1769 = vmatprep.subr.mxu1 %v1436_v28  ;;  %1797 = vmatpush3.msra.mxu0 %v1457_v46 }
 0x10c   : > { %1770 = vmatpush3.msra.mxu1 %v1436_v28  ;;  %1798 = vmatprep.subr.mxu0 %v1456_v48  ;;  %v1472_v28 = vld [vmem:[%s2380_s5 + $0x148] sm:$0xff] }
 0x10d   : > { %1771 = vmatprep.subr.mxu1 %v1435_v29  ;;  %1799 = vmatpush3.msra.mxu0 %v1456_v48 }
 0x10e   : > { %1772 = vmatpush3.msra.mxu1 %v1435_v29  ;;  %1800 = vmatprep.subr.mxu0 %v1455_v50  ;;  %v1471_v29 = vld [vmem:[%s2380_s5 + $0x140] sm:$0xff] }
 0x10f   : > { %1773 = vmatprep.subr.mxu1 %v1434_v30  ;;  %1801 = vmatpush3.msra.mxu0 %v1455_v50 }
 0x110   : > { %1774 = vmatpush3.msra.mxu1 %v1434_v30  ;;  %1802 = vmatprep.subr.mxu0 %v1454_v51  ;;  %v1470_v30 = vld [vmem:[%s2380_s5 + $0x138] sm:$0xff] }
 0x111   : > { %1775 = vmatprep.subr.mxu1 %v1433_v31  ;;  %1803 = vmatpush3.msra.mxu0 %v1454_v51 }
 0x112   : > { %1776 = vmatpush3.msra.mxu1 %v1433_v31  ;;  %1804 = vmatprep.subr.mxu0 %v1453_v52  ;;  %v1469_v31 = vld [vmem:[%s2380_s5 + $0x130] sm:$0xff] }
 0x113   : > { %1777 = vmatprep.subr.mxu1 %v1432_v32  ;;  %1805 = vmatpush3.msra.mxu0 %v1453_v52 }
 0x114   : > { %1778 = vmatpush3.msra.mxu1 %v1432_v32  ;;  %1806 = vmatprep.subr.mxu0 %v1452_v53  ;;  %v1468_v32 = vld [vmem:[%s2380_s5 + $0x128] sm:$0xff] }
 0x115   : > { %1779 = vmatprep.subr.mxu1 %v1431_v33  ;;  %1807 = vmatpush3.msra.mxu0 %v1452_v53 }
 0x116   : > { %1780 = vmatpush3.msra.mxu1 %v1431_v33  ;;  %1808 = vmatprep.subr.mxu0 %v1451_v54  ;;  %v1467_v33 = vld [vmem:[%s2380_s5 + $0x120] sm:$0xff] }
 0x117   : > { %1781 = vmatprep.subr.mxu1 %v1430_v34  ;;  %1809 = vmatpush3.msra.mxu0 %v1451_v54 }
 0x118   : > { %1782 = vmatpush3.msra.mxu1 %v1430_v34  ;;  %1810 = vmatprep.subr.mxu0 %v1450_v56  ;;  %v1466_v34 = vld [vmem:[%s2380_s5 + $0x118] sm:$0xff] }
 0x119   : > { %1784 = vmatmul.mubr.f32.vlgmr.msra.gmra.mxu1 %v850_v35  ;;  %1821 = vmatprep.subr.mxu1 %v980_v37  ;;  %v1465_v35 = vld [vmem:[%s2380_s5 + $0x110] sm:$0xff] }
 0x11a   : > { %1822 = vmatpush3.msra.mxu1 %v980_v37  ;;  %1811 = vmatpush3.msra.mxu0 %v1450_v56  ;;  %v1463_v37 = vld [vmem:[%s2380_s5 + $0x100] sm:$0xff] }
 0x11b   : > { %1823 = vmatprep.subr.mxu1 %v979_v39  ;;  %1812 = vmatprep.subr.mxu0 %v1449_v58 }
 0x11c   : > { %1824 = vmatpush3.msra.mxu1 %v979_v39  ;;  %1813 = vmatpush3.msra.mxu0 %v1449_v58 }
 0x11d   : > { %1825 = vmatprep.subr.mxu1 %v978_v41  ;;  %1814 = vmatprep.subr.mxu0 %v1448_v60 }
 0x11e   : > { %1826 = vmatpush3.msra.mxu1 %v978_v41  ;;  %1815 = vmatpush3.msra.mxu0 %v1448_v60 }
 0x11f   : > { %1827 = vmatprep.subr.mxu1 %v977_v43  ;;  %1816 = vmatprep.subr.mxu0 %v1447_v62 }
 0x120   : > { %1828 = vmatpush3.msra.mxu1 %v977_v43  ;;  %1817 = vmatpush3.msra.mxu0 %v1447_v62 }
 0x121   : > { %1829 = vmatprep.subr.mxu1 %v976_v45  ;;  %1856 = vmatprep.subr.mxu0 %v1478_v0 }
 0x122   : > { %1830 = vmatpush3.msra.mxu1 %v976_v45  ;;  %v1479_v45 = vld [vmem:[%s2381_s6] ss:$0 sm:$0xff] }
 0x123   : > { %1831 = vmatprep.subr.mxu1 %v975_v47 }
 0x124   : > { %1832 = vmatpush3.msra.mxu1 %v975_v47 }
 0x125   : > { %1833 = vmatprep.subr.mxu1 %v974_v49 }
 0x126   : > { %1834 = vmatpush3.msra.mxu1 %v974_v49 }
 0x127   : > { %1835 = vmatprep.subr.mxu1 %v973_v55 }
 0x128   : > { %1836 = vmatpush3.msra.mxu1 %v973_v55 }
 0x129   : > { %1837 = vmatprep.subr.mxu1 %v972_v57 }
 0x12a   : > { %1838 = vmatpush3.msra.mxu1 %v972_v57 }
 0x12b   : > { %1839 = vmatprep.subr.mxu1 %v971_v59 }
 0x12c   : > { %1840 = vmatpush3.msra.mxu1 %v971_v59 }
 0x12d   : > { %1841 = vmatprep.subr.mxu1 %v970_v61 }
 0x12e   : > { %1842 = vmatpush3.msra.mxu1 %v970_v61 }
 0x12f   : > { %1843 = vmatprep.subr.mxu1 %v969_v63 }
 0x130   : > { %1844 = vmatpush3.msra.mxu1 %v969_v63 }
 0x131   : > { %1845 = vmatprep.subr.mxu1 %v968_v1 }
 0x132   : > { %1846 = vmatpush3.msra.mxu1 %v968_v1 }
 0x133   : > { %1847 = vmatprep.subr.mxu1 %v967_v2 }
 0x134   : > { %1848 = vmatpush3.msra.mxu1 %v967_v2 }
 0x135   : > { %1849 = vmatprep.subr.mxu1 %v966_v3 }
 0x136   : > { %1850 = vmatpush3.msra.mxu1 %v966_v3 }
 0x137   : > { %1851 = vmatprep.subr.mxu1 %v965_v4 }
 0x138   : > { %1852 = vmatpush3.msra.mxu1 %v965_v4 }
 0x1b8   : > { %v1715_v5 = vpop.f32.mrf.mxu1 }
 0x1ba   : > { %v765_v7 = vpop.f32.mrf.mxu1 }
 0x1c0   : > { %v1750_v6 = vpop.f32.mrf.mxu0 }
 0x1c1   : > { %v846_v9 = vadd.f32 %v1750_v6, %v1715_v5 }
 0x1c2   : > { %v840_v8 = vpop.f32.mrf.mxu0 }
 0x1c3   : > { %v841_v12 = vadd.f32 %v840_v8, %v765_v7 }
 0x1d9   : > { %v1785_v10 = vpop.f32.mrf.mxu1 }
 0x1da   : > { %v944_v13 = vadd.f32 %v1785_v10, %v846_v9 }
 0x1db   : > { %v934_v14 = vpop.f32.mrf.mxu1 }
 0x1dc   : > { %v953_v15 = vadd.f32 %v1446_v11, %v944_v13  ;;  %v943_v16 = vadd.f32 %v934_v14, %v841_v12 }
 0x1de   : > { %955 = vst [vmem:[%s352_s25 + $0x8] sm:$0xff] %v953_v15  ;;  %v957_v17 = vmax.f32 %v953_v15, 0.0  ;;  %v952_v18 = vadd.f32 %v1446_v11, %v943_v16 }
 0x1e0   : > { %962 = vst [vmem:[#allocation4 + $0x9] sm:$0xff] %v957_v17  ;;  %954 = vst [vmem:[%s352_s25] sm:$0xff] %v952_v18  ;;  %v956_v19 = vmax.f32 %v952_v18, 0.0 }
 0x1e2   : > { %961 = vst [vmem:[#allocation4 + $0x1] sm:$0xff] %v956_v19  ;;  %1818 = vmatprep.mubr.f32.mxu0 %v956_v19 }
 0x1e3   : > { %1819 = vmatmul.mubr.f32.vlgmr.msra.gmra.mxu0 %v957_v17 }
 0x1e4   : > { %1857 = vmatpush3.msra.mxu0 %v1478_v0 }
 0x1e5   : > { %1858 = vmatprep.subr.mxu0 %v1477_v20 }
 0x1e6   : > { %1859 = vmatpush3.msra.mxu0 %v1477_v20 }
 0x1e7   : > { %1860 = vmatprep.subr.mxu0 %v1476_v21  ;;  %v1151_v38 = vld [vmem:[#allocation4 + $0xa] sm:$0xff] }
 0x1e8   : > { %1861 = vmatpush3.msra.mxu0 %v1476_v21 }
 0x1e9   : > { %v963_v24 = vld [vmem:[#allocation4] sm:$0xff]  ;;  %v964_v25 = vld [vmem:[#allocation4 + $0x8] sm:$0xff]  ;;  %1862 = vmatprep.subr.mxu0 %v1475_v22 }
 0x1ea   : > { %v1150_v26 = vld [vmem:[#allocation4 + $0x2] sm:$0xff]  ;;  %1853 = vmatprep.mubr.f32.mxu1 %v963_v24  ;;  %1863 = vmatpush3.msra.mxu0 %v1475_v22 }
 0x1eb   : > { %1888 = vmatprep.mubr.f32.mxu0 %v1150_v26  ;;  %1854 = vmatmul.mubr.f32.vlgmr.msra.gmra.mxu1 %v964_v25 }
 0x1ec   : > { %1864 = vmatprep.subr.mxu0 %v1474_v23 }
 0x1ed   : > { %1865 = vmatpush3.msra.mxu0 %v1474_v23 }
 0x1ee   : > { %1866 = vmatprep.subr.mxu0 %v1473_v27 }
 0x1ef   : > { %1867 = vmatpush3.msra.mxu0 %v1473_v27 }
 0x1f0   : > { %1868 = vmatprep.subr.mxu0 %v1472_v28 }
 0x1f1   : > { %1869 = vmatpush3.msra.mxu0 %v1472_v28 }
 0x1f2   : > { %1870 = vmatprep.subr.mxu0 %v1471_v29 }
 0x1f3   : > { %1871 = vmatpush3.msra.mxu0 %v1471_v29 }
 0x1f4   : > { %1872 = vmatprep.subr.mxu0 %v1470_v30 }
 0x1f5   : > { %1873 = vmatpush3.msra.mxu0 %v1470_v30 }
 0x1f6   : > { %1874 = vmatprep.subr.mxu0 %v1469_v31 }
 0x1f7   : > { %1875 = vmatpush3.msra.mxu0 %v1469_v31 }
 0x1f8   : > { %1876 = vmatprep.subr.mxu0 %v1468_v32 }
 0x1f9   : > { %1877 = vmatpush3.msra.mxu0 %v1468_v32 }
 0x1fa   : > { %1878 = vmatprep.subr.mxu0 %v1467_v33 }
 0x1fb   : > { %1879 = vmatpush3.msra.mxu0 %v1467_v33 }
 0x1fc   : > { %1880 = vmatprep.subr.mxu0 %v1466_v34 }
 0x1fd   : > { %1881 = vmatpush3.msra.mxu0 %v1466_v34 }
 0x1fe   : > { %1882 = vmatprep.subr.mxu0 %v1465_v35 }
 0x1ff   : > { %1883 = vmatpush3.msra.mxu0 %v1465_v35 }
 0x200   : > { %1884 = vmatprep.subr.mxu0 %v1464_v36 }
 0x201   : > { %1885 = vmatpush3.msra.mxu0 %v1464_v36 }
 0x202   : > { %1886 = vmatprep.subr.mxu0 %v1463_v37 }
 0x203   : > { %1887 = vmatpush3.msra.mxu0 %v1463_v37 }
 0x204   : > { %1889 = vmatmul.mubr.f32.vlgmr.msra.gmra.mxu0 %v1151_v38 }
 0x2a3   : > { %v1820_v39 = vpop.f32.mrf.mxu0 }
 0x2a5   : > { %v1066_v41 = vpop.f32.mrf.mxu0 }
 0x2ab   : > { %v1855_v40 = vpop.f32.mrf.mxu1 }
 0x2ac   : > { %v1147_v43 = vadd.f32 %v1855_v40, %v1820_v39 }
 0x2ad   : > { %v1141_v42 = vpop.f32.mrf.mxu1 }
 0x2ae   : > { %v1142_v46 = vadd.f32 %v1141_v42, %v1066_v41 }
 0x2c4   : > { %v1890_v44 = vpop.f32.mrf.mxu0 }
 0x2c5   : > { %v1245_v47 = vadd.f32 %v1890_v44, %v1147_v43 }
 0x2c6   : > { %v1235_v48 = vpop.f32.mrf.mxu0 }
 0x2c7   : > { %v1254_v49 = vadd.f32 %v1479_v45, %v1245_v47  ;;  %v1244_v50 = vadd.f32 %v1235_v48, %v1142_v46 }
 0x2c9   : > { %1256 = vst.msk [vmem:[%s357_s22 + $0x8] sm:$0xff] %vm360_vm0, %v1254_v49  ;;  %v1253_v51 = vadd.f32 %v1479_v45, %v1244_v50 }
 0x2cb   : > { %1255 = vst.msk [vmem:[%s357_s22] sm:$0xff] %vm360_vm0, %v1253_v51 }
 0x2cc PF: > { %s20_s30 = sadd.s32 1, %s1906_s30  }
 0x2cd   : > { %p17_p4 = scmp.ge.s32.totalorder %s20_s30, 4  }
 0x2cf   :  { %19 = sbr.rel (!%p17_p4) target bundleno = 1 (0x1), region = 108 }

</bundles_post_ra>
